<compile_context>
chip_gen: v7x
topology: tpu7x:2x2x1
jax: 0.10.0
libtpu: 0.0.40
codegen_flags: <defaults>
</compile_context>

<pallas_src>
import functools

import jax
import jax.numpy as jnp
from jax.experimental import pallas as pl
from jax.experimental.pallas import tpu as pltpu

IN_DIM = 56
H1, H2, H3, OUT = 256, 64, 8, 1
H3P = 128  # fc3 output padded to a full lane width


def _leaky_relu(x, slope=0.01):
    return jnp.where(x >= 0, x, slope * x)


def mlp_kernel(x_ref, w1_ref, b1_ref, w2_ref, b2_ref, w3_ref, b3_ref,
               w4_ref, b4_ref, o_ref):
    # Normalization is pre-folded into (w1, b1); the kernel starts straight at fc1.
    h = x_ref[...]
    h = _leaky_relu(jnp.dot(h, w1_ref[...], preferred_element_type=jnp.float32) + b1_ref[...])
    h = _leaky_relu(jnp.dot(h, w2_ref[...], preferred_element_type=jnp.float32) + b2_ref[...])
    # fc3 is padded to 128 output lanes (zero columns) -> lane-dense vregs in the tail.
    h = _leaky_relu(jnp.dot(h, w3_ref[...], preferred_element_type=jnp.float32) + b3_ref[...])
    # fc4 (K=8 -> N=1): an MXU matmul would be almost entirely padding; use the
    # VPU multiply + XLU lane reduction instead (w4 passed as a zero-padded (1, 128) row).
    o_ref[...] = (jnp.sum(h * w4_ref[...], axis=-1, keepdims=True)
                  + b4_ref[...]).astype(o_ref.dtype)


def _round_up(n, m):
    return ((n + m - 1) // m) * m


def _choose_tile(B, tb):
    """Pick (TB, Bp, n_blocks): sublane-aligned, bounded padding, >=2 steps when it helps."""
    Bp8 = _round_up(max(B, 1), 8)
    n = max(1, pl.cdiv(Bp8, tb))
    # Guarantee at least two grid steps for v7x megacore sharding once each core
    # would get a meaningful tile (>=128 rows each). No effect on v5e/v6e (1 TC).
    if Bp8 >= 256:
        n = max(n, 2)
    TB = _round_up(pl.cdiv(Bp8, n), 8)
    Bp = n * TB
    return TB, Bp, n


@functools.partial(jax.jit, static_argnames=("tb",))
def mlp_forward(x, folded_params, *, tb=4096):
    """x: (B, 56) f32. folded_params: [(w1',b1'), (w2,b2), (w3,b3), (w4,b4)]."""
    (w1, b1), (w2, b2), (w3, b3), (w4, b4) = folded_params

    # Host-side tail padding: fc3 / fc4 operate on full 128-lane vregs.
    w3p = jnp.pad(w3, ((0, 0), (0, H3P - H3)))          # (64, 128), zero cols
    b3p = jnp.pad(b3, ((0, 0), (0, H3P - H3)))          # (1, 128)
    w4_row = jnp.pad(w4.reshape(1, H3), ((0, 0), (0, H3P - H3)))  # (1, 128)

    B = x.shape[0]
    TB, Bp, n_blocks = _choose_tile(B, tb)
    if Bp != B:
        x = jnp.pad(x, ((0, Bp - B), (0, 0)))            # zero rows; sliced off below
    grid = (n_blocks,)

    x_spec = pl.BlockSpec((TB, IN_DIM), lambda i: (i, 0))
    out_spec = pl.BlockSpec((TB, OUT), lambda i: (i, 0))

    def resident(shape):
        # Full-array block, constant index_map -> stays in VMEM across grid steps.
        return pl.BlockSpec(shape, lambda i: (0, 0))

    flops = 2 * Bp * (IN_DIM * H1 + H1 * H2 + H2 * H3P) + 2 * Bp * H3P
    weight_bytes = 4 * (IN_DIM * H1 + H1 + H1 * H2 + H2 + H2 * H3P + H3P + H3P + OUT)
    bytes_accessed = Bp * (IN_DIM * 4 + OUT * 4) + weight_bytes

    out = pl.pallas_call(
        mlp_kernel,
        out_shape=jax.ShapeDtypeStruct((Bp, OUT), jnp.float32),
        grid=grid,
        in_specs=[
            x_spec,
            resident(w1.shape), resident(b1.shape),
            resident(w2.shape), resident(b2.shape),
            resident(w3p.shape), resident(b3p.shape),
            resident(w4_row.shape), resident(b4.shape),
        ],
        out_specs=out_spec,
        compiler_params=pltpu.CompilerParams(
            dimension_semantics=("parallel",),
            # Explicit limit so the larger tile is safe on v5e's 16 MiB default
            # scoped VMEM while staying within v7x's 64 MiB physical VMEM.
            vmem_limit_bytes=32 * 1024 * 1024),
        cost_estimate=pl.CostEstimate(flops=flops, transcendentals=0,
                                      bytes_accessed=bytes_accessed),
    )(x, w1, b1, w2, b2, w3p, b3p, w4_row, b4)
    # Padded batch rows carry bias-derived values; always slice them off.
    return out[:B]


def xavier_uniform(key, fan_in, fan_out):
    bound = (6.0 / (fan_in + fan_out)) ** 0.5
    # stored as (in, out) so the kernel computes x @ W
    return jax.random.uniform(key, (fan_in, fan_out), jnp.float32, -bound, bound)


def make_params(key):
    dims = [(IN_DIM, H1), (H1, H2), (H2, H3), (H3, OUT)]
    params = []
    for (fi, fo) in dims:
        key, sub = jax.random.split(key)
        w = xavier_uniform(sub, fi, fo)
        b = jnp.zeros((1, fo), jnp.float32)        # nn.init.zeros_(bias)
        params.append((w, b))
    return params


def fold_normalization(params, mean, std):
    """Fold (x - mean)/std into fc1: W1' = diag(1/std)@W1, b1' = b1 - (mean/std)@W1."""
    (w1, b1) = params[0]
    inv_std = 1.0 / std                            # (1, 56)
    w1f = w1 * inv_std.T                           # scale each input row of (56, 256)
    b1f = b1 - (mean * inv_std) @ w1               # (1, 256)
    return [(w1f, b1f)] + list(params[1:])


def reference_forward(x, mean, std, params):
    h = (x - mean) / std
    for i, (w, b) in enumerate(params):
        h = h @ w + b
        if i < len(params) - 1:
            h = jnp.where(h >= 0, h, 0.01 * h)
    return h


if __name__ == "__main__":
    key = jax.random.PRNGKey(0)
    k_x, k_m, k_s, k_p, k_x2 = jax.random.split(key, 5)

    B, D = 8, IN_DIM
    x = jax.random.normal(k_x, (B, D), jnp.float32)
    input_mean = jax.random.normal(k_m, (1, D), jnp.float32) * 0.1
    input_std = jax.random.uniform(k_s, (1, D), jnp.float32, 0.5, 1.5)
    params = make_params(k_p)
    folded = fold_normalization(params, input_mean, input_std)

    # small batch (single grid step)
    out = jax.block_until_ready(mlp_forward(x, folded))
    ref = reference_forward(x, input_mean, input_std, params)
    assert out.shape == (B, 1)
    assert jnp.allclose(out, ref, atol=1e-4, rtol=1e-4), (out, ref)

    # non-multiple batch exercises the multi-block grid + padding path (and >=2 steps)
    B2 = 300
    x2 = jax.random.normal(k_x2, (B2, D), jnp.float32)
    out2 = jax.block_until_ready(mlp_forward(x2, folded))
    ref2 = reference_forward(x2, input_mean, input_std, params)
    assert out2.shape == (B2, 1)
    assert jnp.allclose(out2, ref2, atol=1e-4, rtol=1e-4)

    print("KERNEL_OK")
</pallas_src>

<mosaic_0001>
module attributes {stable_mosaic.version = 11 : i64} {
  func.func @mlp_kernel(%arg0: i32, %arg1: memref<8x56xf32, #tpu.memory_space<vmem>>, %arg2: memref<56x256xf32, #tpu.memory_space<vmem>>, %arg3: memref<1x256xf32, #tpu.memory_space<vmem>>, %arg4: memref<256x64xf32, #tpu.memory_space<vmem>>, %arg5: memref<1x64xf32, #tpu.memory_space<vmem>>, %arg6: memref<64x128xf32, #tpu.memory_space<vmem>>, %arg7: memref<1x128xf32, #tpu.memory_space<vmem>>, %arg8: memref<1x128xf32, #tpu.memory_space<vmem>>, %arg9: memref<1x1xf32, #tpu.memory_space<vmem>>, %arg10: memref<8x1xf32, #tpu.memory_space<vmem>>) attributes {dimension_semantics = [#tpu.dimension_semantics<parallel>], iteration_bounds = array<i64: 1>, scalar_prefetch = 0 : i64, scratch_operands = 0 : i64, tpu.core_type = #tpu.core_type<tc>, window_params = [{transform_indices = @transform_0, window_bounds = array<i64: 8, 56>}, {pipeline_mode = #tpu.pipeline_mode<synchronous>, transform_indices = @transform_1, window_bounds = array<i64: 56, 256>}, {pipeline_mode = #tpu.pipeline_mode<synchronous>, transform_indices = @transform_2, window_bounds = array<i64: 1, 256>}, {pipeline_mode = #tpu.pipeline_mode<synchronous>, transform_indices = @transform_3, window_bounds = array<i64: 256, 64>}, {pipeline_mode = #tpu.pipeline_mode<synchronous>, transform_indices = @transform_4, window_bounds = array<i64: 1, 64>}, {pipeline_mode = #tpu.pipeline_mode<synchronous>, transform_indices = @transform_5, window_bounds = array<i64: 64, 128>}, {pipeline_mode = #tpu.pipeline_mode<synchronous>, transform_indices = @transform_6, window_bounds = array<i64: 1, 128>}, {pipeline_mode = #tpu.pipeline_mode<synchronous>, transform_indices = @transform_7, window_bounds = array<i64: 1, 128>}, {pipeline_mode = #tpu.pipeline_mode<synchronous>, transform_indices = @transform_8, window_bounds = array<i64: 1, 1>}, {transform_indices = @transform_9, window_bounds = array<i64: 8, 1>}]} {
    %c0 = arith.constant 0 : index
    %c0_0 = arith.constant 0 : index
    %0 = vector.load %arg1[%c0, %c0_0] : memref<8x56xf32, #tpu.memory_space<vmem>>, vector<8x56xf32>
    %c0_1 = arith.constant 0 : index
    %c0_2 = arith.constant 0 : index
    %1 = vector.load %arg2[%c0_1, %c0_2] : memref<56x256xf32, #tpu.memory_space<vmem>>, vector<56x256xf32>
    %cst = arith.constant dense<0.000000e+00> : vector<8x256xf32>
    %2 = tpu.matmul %0, %1, %cst {dimension_numbers = #tpu.dot_dimension_numbers<[1], [0], [0], [1], [0, 0, 1, 1], [], []>} : vector<8x56xf32>, vector<56x256xf32>, vector<8x256xf32> -> vector<8x256xf32>
    %c0_3 = arith.constant 0 : index
    %c0_4 = arith.constant 0 : index
    %3 = vector.load %arg3[%c0_3, %c0_4] : memref<1x256xf32, #tpu.memory_space<vmem>>, vector<1x256xf32>
    %4 = vector.broadcast %3 : vector<1x256xf32> to vector<8x256xf32>
    %5 = arith.addf %2, %4 : vector<8x256xf32>
    %cst_5 = arith.constant 0.000000e+00 : f32
    %6 = vector.broadcast %cst_5 : f32 to vector<8x256xf32>
    %7 = arith.cmpf oge, %5, %6 : vector<8x256xf32>
    %cst_6 = arith.constant 0.00999999977 : f32
    %8 = vector.broadcast %cst_6 : f32 to vector<8x256xf32>
    %9 = arith.mulf %8, %5 : vector<8x256xf32>
    %10 = arith.select %7, %5, %9 : vector<8x256xi1>, vector<8x256xf32>
    %c0_7 = arith.constant 0 : index
    %c0_8 = arith.constant 0 : index
    %11 = vector.load %arg4[%c0_7, %c0_8] : memref<256x64xf32, #tpu.memory_space<vmem>>, vector<256x64xf32>
    %cst_9 = arith.constant dense<0.000000e+00> : vector<8x64xf32>
    %12 = tpu.matmul %10, %11, %cst_9 {dimension_numbers = #tpu.dot_dimension_numbers<[1], [0], [0], [1], [0, 0, 1, 1], [], []>} : vector<8x256xf32>, vector<256x64xf32>, vector<8x64xf32> -> vector<8x64xf32>
    %c0_10 = arith.constant 0 : index
    %c0_11 = arith.constant 0 : index
    %13 = vector.load %arg5[%c0_10, %c0_11] : memref<1x64xf32, #tpu.memory_space<vmem>>, vector<1x64xf32>
    %14 = vector.broadcast %13 : vector<1x64xf32> to vector<8x64xf32>
    %15 = arith.addf %12, %14 : vector<8x64xf32>
    %cst_12 = arith.constant 0.000000e+00 : f32
    %16 = vector.broadcast %cst_12 : f32 to vector<8x64xf32>
    %17 = arith.cmpf oge, %15, %16 : vector<8x64xf32>
    %cst_13 = arith.constant 0.00999999977 : f32
    %18 = vector.broadcast %cst_13 : f32 to vector<8x64xf32>
    %19 = arith.mulf %18, %15 : vector<8x64xf32>
    %20 = arith.select %17, %15, %19 : vector<8x64xi1>, vector<8x64xf32>
    %c0_14 = arith.constant 0 : index
    %c0_15 = arith.constant 0 : index
    %21 = vector.load %arg6[%c0_14, %c0_15] : memref<64x128xf32, #tpu.memory_space<vmem>>, vector<64x128xf32>
    %cst_16 = arith.constant dense<0.000000e+00> : vector<8x128xf32>
    %22 = tpu.matmul %20, %21, %cst_16 {dimension_numbers = #tpu.dot_dimension_numbers<[1], [0], [0], [1], [0, 0, 1, 1], [], []>} : vector<8x64xf32>, vector<64x128xf32>, vector<8x128xf32> -> vector<8x128xf32>
    %c0_17 = arith.constant 0 : index
    %c0_18 = arith.constant 0 : index
    %23 = vector.load %arg7[%c0_17, %c0_18] : memref<1x128xf32, #tpu.memory_space<vmem>>, vector<1x128xf32>
    %24 = vector.broadcast %23 : vector<1x128xf32> to vector<8x128xf32>
    %25 = arith.addf %22, %24 : vector<8x128xf32>
    %cst_19 = arith.constant 0.000000e+00 : f32
    %26 = vector.broadcast %cst_19 : f32 to vector<8x128xf32>
    %27 = arith.cmpf oge, %25, %26 : vector<8x128xf32>
    %cst_20 = arith.constant 0.00999999977 : f32
    %28 = vector.broadcast %cst_20 : f32 to vector<8x128xf32>
    %29 = arith.mulf %28, %25 : vector<8x128xf32>
    %30 = arith.select %27, %25, %29 : vector<8x128xi1>, vector<8x128xf32>
    %c0_21 = arith.constant 0 : index
    %c0_22 = arith.constant 0 : index
    %31 = vector.load %arg8[%c0_21, %c0_22] : memref<1x128xf32, #tpu.memory_space<vmem>>, vector<1x128xf32>
    %32 = vector.broadcast %31 : vector<1x128xf32> to vector<8x128xf32>
    %33 = arith.mulf %30, %32 : vector<8x128xf32>
    %cst_23 = arith.constant dense<0.000000e+00> : vector<8xf32>
    %34 = vector.multi_reduction <add>, %33, %cst_23 [1] : vector<8x128xf32> to vector<8xf32>
    %35 = vector.shape_cast %34 : vector<8xf32> to vector<8x1xf32>
    %c0_24 = arith.constant 0 : index
    %c0_25 = arith.constant 0 : index
    %36 = vector.load %arg9[%c0_24, %c0_25] : memref<1x1xf32, #tpu.memory_space<vmem>>, vector<1x1xf32>
    %37 = vector.broadcast %36 : vector<1x1xf32> to vector<8x1xf32>
    %38 = arith.addf %35, %37 : vector<8x1xf32>
    %c0_26 = arith.constant 0 : index
    %c0_27 = arith.constant 0 : index
    %39 = vector.load %arg10[%c0_26, %c0_27] : memref<8x1xf32, #tpu.memory_space<vmem>>, vector<8x1xf32>
    tpu.vector_store %arg10[%c0_26, %c0_27], %38 {strides = array<i32>} : memref<8x1xf32, #tpu.memory_space<vmem>>, vector<8x1xf32>,
    return
  }
  func.func @transform_0(%arg0: i32) -> (i32, i32) {
    %c0_i32 = arith.constant 0 : i32
    %c0_i32_0 = arith.constant 0 : i32
    return %arg0, %c0_i32 : i32, i32
  }
  func.func @transform_1(%arg0: i32) -> (i32, i32) {
    %c0_i32 = arith.constant 0 : i32
    %c0_i32_0 = arith.constant 0 : i32
    %c0_i32_1 = arith.constant 0 : i32
    return %c0_i32, %c0_i32_0 : i32, i32
  }
  func.func @transform_2(%arg0: i32) -> (i32, i32) {
    %c0_i32 = arith.constant 0 : i32
    %c0_i32_0 = arith.constant 0 : i32
    %c0_i32_1 = arith.constant 0 : i32
    return %c0_i32, %c0_i32_0 : i32, i32
  }
  func.func @transform_3(%arg0: i32) -> (i32, i32) {
    %c0_i32 = arith.constant 0 : i32
    %c0_i32_0 = arith.constant 0 : i32
    %c0_i32_1 = arith.constant 0 : i32
    return %c0_i32, %c0_i32_0 : i32, i32
  }
  func.func @transform_4(%arg0: i32) -> (i32, i32) {
    %c0_i32 = arith.constant 0 : i32
    %c0_i32_0 = arith.constant 0 : i32
    %c0_i32_1 = arith.constant 0 : i32
    return %c0_i32, %c0_i32_0 : i32, i32
  }
  func.func @transform_5(%arg0: i32) -> (i32, i32) {
    %c0_i32 = arith.constant 0 : i32
    %c0_i32_0 = arith.constant 0 : i32
    %c0_i32_1 = arith.constant 0 : i32
    return %c0_i32, %c0_i32_0 : i32, i32
  }
  func.func @transform_6(%arg0: i32) -> (i32, i32) {
    %c0_i32 = arith.constant 0 : i32
    %c0_i32_0 = arith.constant 0 : i32
    %c0_i32_1 = arith.constant 0 : i32
    return %c0_i32, %c0_i32_0 : i32, i32
  }
  func.func @transform_7(%arg0: i32) -> (i32, i32) {
    %c0_i32 = arith.constant 0 : i32
    %c0_i32_0 = arith.constant 0 : i32
    %c0_i32_1 = arith.constant 0 : i32
    return %c0_i32, %c0_i32_0 : i32, i32
  }
  func.func @transform_8(%arg0: i32) -> (i32, i32) {
    %c0_i32 = arith.constant 0 : i32
    %c0_i32_0 = arith.constant 0 : i32
    %c0_i32_1 = arith.constant 0 : i32
    return %c0_i32, %c0_i32_0 : i32, i32
  }
  func.func @transform_9(%arg0: i32) -> (i32, i32) {
    %c0_i32 = arith.constant 0 : i32
    %c0_i32_0 = arith.constant 0 : i32
    return %arg0, %c0_i32 : i32, i32
  }
}

</mosaic_0001>

<bundles_post_ra>
// kernel: mlp_forward.1
= control target key start
LH: loop header
LB: loop body
LE: loop exit
PB: predicated region body
PF: predicated region fallthrough
CT: control target
= control target key end

     0   :  { %v498_v3 = vmov 0.0   ;;  %vm61_vm0 = vcmask 457728   ;;  %vm500_vm3 = vmmov 0   ;;  %vm269_vm5 = vcmask 523264   ;;  %s736_s1 = inlined_call_operand.vmem [shape: f32[56,256], index: 1, kind: input, shape index: {}]   ;;  %s737_s3 = inlined_call_operand.vmem [shape: f32[256,64], index: 3, kind: input, shape index: {}]   ;;  %s738_s0 = inlined_call_operand.vmem [shape: f32[8,56], index: 0, kind: input, shape index: {}]   ;;  %s739_s5 = inlined_call_operand.vmem [shape: f32[64,128], index: 5, kind: input, shape index: {}]   ;;  %s740_s2 = inlined_call_operand.vmem [shape: f32[1,256], index: 2, kind: input, shape index: {}]   ;;  %s741_s4 = inlined_call_operand.vmem [shape: f32[1,64], index: 4, kind: input, shape index: {}]   ;;  %s742_s8 = inlined_call_operand.<no memory space> [shape: f32[1,1], index: 8, kind: input, shape index: {}]   ;;  %s743_s6 = inlined_call_operand.vmem [shape: f32[1,128], index: 6, kind: input, shape index: {}]   ;;  %s744_s7 = inlined_call_operand.vmem [shape: f32[1,128], index: 7, kind: input, shape index: {}]   ;;  %s745_s9 = inlined_call_operand.vmem [shape: f32[8,1], index: 9, kind: output, shape index: {}]  }
   0x1   :  { %v36_v0 = vld [vmem:[%s736_s1 + $0x8] sm:$0xff]  ;;  %v38_v1 = vld [vmem:[%s736_s1 + $0x18] sm:$0xff]  ;;  %v35_v2 = vld [vmem:[%s736_s1] sm:$0xff]  ;;  %129 = vmatprep.mubr.f32.mxu0 %v498_v3  ;;  %vm364_vm7 = vcmask 7168  }
   0x2   :  { %v439_v4 = vpack.c.bf16 %v38_v1, %v36_v0  ;;  %v37_v5 = vld [vmem:[%s736_s1 + $0x10] sm:$0xff]  ;;  %v40_v6 = vld [vmem:[%s736_s1 + $0x28] sm:$0xff]  ;;  %v42_v7 = vld [vmem:[%s736_s1 + $0x38] sm:$0xff] }
   0x3   :  { %v441_v8 = vpack.c.bf16 %v37_v5, %v35_v2  ;;  %v443_v9 = vpack.c.bf16 %v42_v7, %v40_v6  ;;  %v39_v10 = vld [vmem:[%s736_s1 + $0x20] sm:$0xff]  ;;  %v41_v11 = vld [vmem:[%s736_s1 + $0x30] sm:$0xff]  ;;  %v44_v12 = vld [vmem:[%s736_s1 + $0x48] sm:$0xff]  ;;  %v499_v7 = vmov 0.0|0.0  }
   0x4   :  { %440 = vmatprep.subr.bf16.mxu0 %v439_v4  ;;  %v46_v13 = vld [vmem:[%s736_s1 + $0x58] sm:$0xff]  ;;  %v445_v14 = vpack.c.bf16 %v41_v11, %v39_v10  ;;  %v43_v15 = vld [vmem:[%s736_s1 + $0x40] sm:$0xff]  ;;  %v45_v16 = vld [vmem:[%s736_s1 + $0x50] sm:$0xff] }
   0x5   :  { %442 = vmatpush1.bf16.msra.mxu0 %v441_v8  ;;  %v447_v17 = vpack.c.bf16 %v46_v13, %v44_v12  ;;  %v158_v18 = vld [vmem:[%s737_s3 + $0x80] sm:$0xff]  ;;  %v159_v19 = vld [vmem:[%s737_s3 + $0x88] sm:$0xff]  ;;  %v160_v23 = vld [vmem:[%s737_s3 + $0x90] sm:$0xff]  ;;  %v449_v30 = vpack.c.bf16 %v45_v16, %v43_v15 }
   0x6   :  { %444 = vmatprep.subr.bf16.mxu0 %v443_v9  ;;  %v142_v20 = vld [vmem:[%s737_s3] sm:$0xff]  ;;  %v451_v21 = vpack.c.bf16 %v159_v19, %v158_v18  ;;  %v143_v22 = vld [vmem:[%s737_s3 + $0x8] sm:$0xff]  ;;  %v161_v24 = vld [vmem:[%s737_s3 + $0x98] sm:$0xff] }
   0x7   :  { %v453_v25 = vpack.c.bf16 %v143_v22, %v142_v20  ;;  %v455_v26 = vpack.c.bf16 %v161_v24, %v160_v23  ;;  %v144_v27 = vld [vmem:[%s737_s3 + $0x10] sm:$0xff]  ;;  %v145_v28 = vld [vmem:[%s737_s3 + $0x18] sm:$0xff]  ;;  %v162_v29 = vld [vmem:[%s737_s3 + $0xa0] sm:$0xff] }
   0x8   :  { %452 = vmatprep.subr.bf16.mxu1 %v451_v21  ;;  %v163_v31 = vld [vmem:[%s737_s3 + $0xa8] sm:$0xff]  ;;  %v457_v32 = vpack.c.bf16 %v145_v28, %v144_v27  ;;  %v146_v35 = vld [vmem:[%s737_s3 + $0x20] sm:$0xff]  ;;  %v164_v37 = vld [vmem:[%s737_s3 + $0xb0] sm:$0xff] }
   0x9   :  { %446 = vmatpush1.bf16.msra.mxu0 %v445_v14  ;;  %454 = vmatpush3.bf16.msra.mxu1 %v453_v25  ;;  %v48_v33 = vld [vmem:[%s736_s1 + $0x68] sm:$0xff]  ;;  %v459_v34 = vpack.c.bf16 %v163_v31, %v162_v29  ;;  %v165_v38 = vld [vmem:[%s737_s3 + $0xb8] sm:$0xff]  ;;  %v47_v39 = vld [vmem:[%s736_s1 + $0x60] sm:$0xff]  ;;  %v51_v14 = vlaneseq }
   0xa   :  { %448 = vmatprep.subr.bf16.mxu0 %v447_v17  ;;  %456 = vmatprep.subr.bf16.mxu1 %v455_v26  ;;  %v147_v36 = vld [vmem:[%s737_s3 + $0x28] sm:$0xff]  ;;  %v34_v41 = vld [vmem:[%s738_s0] sm:$0xff]  ;;  %v463_v42 = vpack.c.bf16 %v165_v38, %v164_v37  ;;  %v148_v43 = vld [vmem:[%s737_s3 + $0x30] sm:$0xff] }
   0xb   :  { %v461_v40 = vpack.c.bf16 %v147_v36, %v146_v35  ;;  %v149_v44 = vld [vmem:[%s737_s3 + $0x38] sm:$0xff]  ;;  %v166_v45 = vld [vmem:[%s737_s3 + $0xc0] sm:$0xff]  ;;  %v167_v46 = vld [vmem:[%s737_s3 + $0xc8] sm:$0xff]  ;;  %v52_v15 = vshrl.u32 %v51_v14, 7 }
   0xc   :  { %v465_v47 = vpack.c.bf16 %v149_v44, %v148_v43  ;;  %v467_v48 = vpack.c.bf16 %v167_v46, %v166_v45  ;;  %v150_v49 = vld [vmem:[%s737_s3 + $0x40] sm:$0xff]  ;;  %v151_v50 = vld [vmem:[%s737_s3 + $0x48] sm:$0xff]  ;;  %v168_v51 = vld [vmem:[%s737_s3 + $0xd0] sm:$0xff] }
   0xd   :  { %450 = vmatpush1.bf16.msra.mxu0 %v449_v30  ;;  %458 = vmatpush3.bf16.msra.mxu1 %v457_v32  ;;  %v169_v52 = vld [vmem:[%s737_s3 + $0xd8] sm:$0xff]  ;;  %v469_v53 = vpack.c.bf16 %v151_v50, %v150_v49  ;;  %v152_v55 = vld [vmem:[%s737_s3 + $0x50] sm:$0xff]  ;;  %v170_v58 = vld [vmem:[%s737_s3 + $0xe0] sm:$0xff]  ;;  %v53_v16 = vsub.s32 0, %v52_v15  ;;  %v57_v18 = vsub.s32 1, %v52_v15 }
   0xe   :  { %77 = vmatprep.subr.mxu0 %v48_v33  ;;  %460 = vmatprep.subr.bf16.mxu1 %v459_v34  ;;  %v471_v54 = vpack.c.bf16 %v169_v52, %v168_v51  ;;  %v153_v56 = vld [vmem:[%s737_s3 + $0x58] sm:$0xff]  ;;  %v171_v59 = vld [vmem:[%s737_s3 + $0xe8] sm:$0xff]  ;;  %v154_v61 = vld [vmem:[%s737_s3 + $0x60] sm:$0xff] }
   0xf   :  { %v473_v57 = vpack.c.bf16 %v153_v56, %v152_v55  ;;  %v475_v60 = vpack.c.bf16 %v171_v59, %v170_v58  ;;  %v155_v62 = vld [vmem:[%s737_s3 + $0x68] sm:$0xff]  ;;  %v172_v0 = vld [vmem:[%s737_s3 + $0xf0] sm:$0xff]  ;;  %v173_v1 = vld [vmem:[%s737_s3 + $0xf8] sm:$0xff] }
  0x10   :  { %v477_v63 = vpack.c.bf16 %v155_v62, %v154_v61  ;;  %v479_v2 = vpack.c.bf16 %v173_v1, %v172_v0  ;;  %v156_v4 = vld [vmem:[%s737_s3 + $0x70] sm:$0xff]  ;;  %v157_v5 = vld [vmem:[%s737_s3 + $0x78] sm:$0xff]  ;;  %v254_v8 = vld [vmem:[%s739_s5] sm:$0xff] }
  0x11   :  { %78 = vmatpush1.msra.mxu0 %v47_v39  ;;  %462 = vmatpush3.bf16.msra.mxu1 %v461_v40  ;;  %v481_v6 = vpack.c.bf16 %v157_v5, %v156_v4  ;;  %v255_v9 = vld [vmem:[%s739_s5 + $0x8] sm:$0xff]  ;;  %v256_v10 = vld [vmem:[%s739_s5 + $0x10] sm:$0xff]  ;;  %v257_v12 = vld [vmem:[%s739_s5 + $0x18] sm:$0xff] }
  0x12   :  { %370 = vmatmul.mubr.msk.f32.vlgmr.msra.gmra.mrb[0].mxu0 %vm61_vm0, %v34_v41  ;;  %464 = vmatprep.subr.bf16.mxu1 %v463_v42  ;;  %v484_v11 = vpack.c.bf16 %v255_v9, %v254_v8  ;;  %v487_v13 = vpack.c.bf16 %v257_v12, %v256_v10  ;;  %v49_v17 = vld [vmem:[%s740_s2] sm:$0x3]  ;;  %v259_v30 = vld [vmem:[%s739_s5 + $0x28] sm:$0xff]  ;;  %v260_v32 = vld [vmem:[%s739_s5 + $0x30] sm:$0xff]  ;;  %v14_v42 = vstv %s742_s8 }
  0x13   :  { %483 = vmatprep.subr.bf16.mxu0 %v499_v7  ;;  %v54_v19 = vrot.slane %v49_v17, %v53_v16  ;;  %v58_v20 = vrot.slane %v49_v17, %v57_v18  ;;  %v258_v29 = vld [vmem:[%s739_s5 + $0x20] sm:$0xff]  ;;  %v261_v33 = vld [vmem:[%s739_s5 + $0x38] sm:$0xff]  ;;  %436 = vmatprep.mubr.msk.f32.mxu0 %vm500_vm3, %v498_v3  ;;  %15 = vst [vmem:[#allocation2] sm:$0x1] %v14_v42 }
  0x14   :  { %485 = vmatpush3.bf16.msra.mxu0 %v484_v11  ;;  %v490_v31 = vpack.c.bf16 %v259_v30, %v258_v29  ;;  %v493_v34 = vpack.c.bf16 %v261_v33, %v260_v32  ;;  %v371_v36 = vld [vmem:[%s741_s4] ss:$0 sm:$0xff] }
  0x15   :  { %466 = vmatpush3.bf16.msra.mxu1 %v465_v47  ;;  %486 = vmatprep.subr.bf16.mxu0 %v499_v7  ;;  %v372_v3 = vld [vmem:[%s743_s6] ss:$0 sm:$0xff] }
  0x16   :  { %468 = vmatprep.subr.bf16.mxu1 %v467_v48  ;;  %v374_v47 = vld [vmem:[%s744_s7] ss:$0 sm:$0xff] }
  0x18   :  { %488 = vmatpush3.bf16.msra.mxu0 %v487_v13 }
  0x19   :  { %470 = vmatpush3.bf16.msra.mxu1 %v469_v53  ;;  %489 = vmatprep.subr.bf16.mxu0 %v499_v7 }
  0x1a   :  { %472 = vmatprep.subr.bf16.mxu1 %v471_v54  ;;  %v375_v50 = vld [vmem:[#allocation2] ss:$0 sm:$0xff] }
  0x1c   :  { %491 = vmatpush3.bf16.msra.mxu0 %v490_v31 }
  0x1d   :  { %474 = vmatpush3.bf16.msra.mxu1 %v473_v57  ;;  %492 = vmatprep.subr.bf16.mxu0 %v499_v7 }
  0x1e   :  { %476 = vmatprep.subr.bf16.mxu1 %v475_v60 }
  0x20   :  { %494 = vmatpush3.bf16.msra.mxu0 %v493_v34 }
  0x21   :  { %478 = vmatpush3.bf16.msra.mxu1 %v477_v63 }
  0x22   :  { %480 = vmatprep.subr.bf16.mxu1 %v479_v2 }
  0x25   :  { %482 = vmatpush3.bf16.msra.mxu1 %v481_v6 }
  0xe5   :  { %v131_v21 = vpop.f32.mrb[0].mxu0 }
  0xe6   :  { %v132_v22 = vadd.f32 %v131_v21, %v54_v19  ;;  %v133_v23 = vpop.f32.mrb[1].mxu0 }
  0xe7   :  { %v134_v24 = vadd.f32 %v133_v23, %v58_v20 }
  0xe8   :  { %v138_v25 = vmul.f32 0.01, %v132_v22  ;;  %vm136_vm2 = vcmp.ge.f32.partialorder %v132_v22, 0.0 }
  0xe9   :  { %vm137_vm1 = vcmp.ge.f32.partialorder %v134_v24, 0.0  ;;  %v139_v26 = vmul.f32 0.01, %v134_v24 }
  0xea   :  { %v140_v28 = vsel %vm136_vm2, %v132_v22, %v138_v25 }
  0xeb   :  { %v141_v27 = vsel %vm137_vm1, %v134_v24, %v139_v26 }
  0xec   :  { %245 = vmatprep.mubr.f32.mxu1 %v141_v27 }
  0xed   :  { %246 = vmatmul.mubr.f32.vlgmr.msra.gmra.mrb[0].mxu1 %v140_v28 }
 0x1c0   :  { %v408_v35 = vpop.f32.mrb[0].mxu1 }
 0x1c1   :  { %v409_v37 = vpop.f32.mrb[1].mxu1 }
 0x1c2   :  { %v410_v38 = vadd.f32 %v409_v37, %v408_v35 }
 0x1c4   :  { %v248_v39 = vadd.f32 %v410_v38, %v371_v36 }
 0x1c6   :  { %vm251_vm4 = vcmp.ge.f32.partialorder %v248_v39, 0.0  ;;  %v252_v40 = vmul.f32 0.01, %v248_v39 }
 0x1c8   :  { %v253_v41 = vsel %vm251_vm4, %v248_v39, %v252_v40 }
 0x1c9   :  { %437 = vmatmul.mubr.msk.f32.vlgmr.msra.gmra.mrb[2].mxu0 %vm269_vm5, %v253_v41 }
 0x29c   :  { %v339_v43 = vpop.f32.mrb[2].mxu0 }
 0x29d   :  { %v340_v44 = vadd.f32 %v372_v3, %v339_v43  ;;  %v438_v45 = vpop.f32.mrb[3].mxu0 }
 0x29f   :  { %v344_v46 = vmul.f32 0.01, %v340_v44  ;;  %vm343_vm6 = vcmp.ge.f32.partialorder %v340_v44, 0.0 }
 0x2a1   :  { %v345_v48 = vsel %vm343_vm6, %v340_v44, %v344_v46 }
 0x2a2   :  { %v353_v49 = vmul.f32 %v374_v47, %v345_v48 }
 0x2a4   :  { %354 = vadd.xlane.f32.xlu0 %v353_v49 }
 0x331   :  { %v355_v51 = vpop.xlane.xlu0 %354 }
 0x332   :  { %v363_v52 = vadd.f32 %v375_v50, %v355_v51 }
 0x334   :  { %365 = vst.msk [vmem:[%s745_s9] sm:$0xff] %vm364_vm7, %v363_v52 }

</bundles_post_ra>
